<compile_context>
chip_gen: v6e
topology: v6e:2x2x1
jax: 0.10.0
libtpu: 0.0.40
codegen_flags: <defaults>
</compile_context>

<pallas_src>
import functools

import jax
import jax.numpy as jnp
from jax import lax
from jax.experimental import pallas as pl
from jax.experimental.pallas import tpu as pltpu


_MIB = 1024 * 1024


def _vmem_budget_bytes():
    """Per-generation VMEM budget (v5e/v6e: 128 MiB physical, v7x: 64 MiB)."""
    cap = 64 * _MIB                       # conservative default = v7x physical
    try:
        info = pltpu.get_tpu_info()
        cap = int(getattr(info, "vmem_capacity_bytes", cap))
    except Exception:                     # CPU tracing / older jax fallback
        pass
    return max(32 * _MIB, min(cap * 3 // 4, 96 * _MIB))


def _pick_tile(n, cap):
    """Largest multiple of 128 dividing n and <= cap; else n (full block)."""
    best = n
    t = 128
    while t <= min(n, cap):
        if n % t == 0:
            best = t
        t += 128
    return best


def _pick_row_tile(h, cap=256):
    """Largest multiple of 8 dividing h and <= cap; else full h."""
    if h <= cap or h % 8 != 0:
        return h
    best = 8
    for t in range(16, cap + 1, 8):
        if h % t == 0:
            best = t
    return best


# ----------------------------------------------------------------------------
# Kernel 1: synthetic depth "model".
# TODO(synk): DepthAnythingV2 (checkpoint-loaded ViT monocular depth net) has no
# clean Pallas equivalent; it is replaced by a deterministic per-pixel depth
# proxy with fixed weights so the warping pipeline is exercised end-to-end.
# ----------------------------------------------------------------------------
_DEPTH_W = (0.30, -0.20, 0.50)
_DEPTH_B = 0.10


def _depth_proxy_kernel(img_ref, depth_ref):
    r = img_ref[0, 0]                                   # (TH, W), values in [-1, 1]
    g = img_ref[0, 1]
    bl = img_ref[0, 2]
    z = _DEPTH_W[0] * r + _DEPTH_W[1] * g + _DEPTH_W[2] * bl + _DEPTH_B
    depth_ref[0, 0] = 1.5 + 2.0 * jax.nn.sigmoid(z)     # positive depth in (1.5, 3.5)


def depth_proxy(image_nchw):
    b, c, h, w = image_nchw.shape
    th = _pick_row_tile(h)
    img = image_nchw.astype(jnp.float32)
    return pl.pallas_call(
        _depth_proxy_kernel,
        out_shape=jax.ShapeDtypeStruct((b, 1, h, w), jnp.float32),
        grid=(b, h // th),
        in_specs=[pl.BlockSpec((1, c, th, w), lambda i, j: (i, 0, j, 0))],
        out_specs=pl.BlockSpec((1, 1, th, w), lambda i, j: (i, 0, j, 0)),
        compiler_params=pltpu.CompilerParams(
            dimension_semantics=("parallel", "parallel")),
    )(img)


# ----------------------------------------------------------------------------
# Kernel 2: per-pixel geometric transform (row-tiled 2-D layout):
#   p_cam2 = K2 @ ( T[:3] @ [depth * K1^{-1} [x, y, 1]^T ; 1] ),  T = inv(C2W2) @ C2W1
#   flow   = p_cam2.xy / p_cam2.z - [x, y],  coords = p_cam2.xy / p_cam2.z + 1,
#   trans_depth = p_cam2.z,  maxd = running per-view max of trans_depth.
# Exact division (approx reciprocal can flip the bilinear floor/ceil bin near
# integer coordinates); pz is clamped away from 0 (points at/behind the camera,
# zero-depth hole pixels fed back in warp #2).
# ----------------------------------------------------------------------------
def _transform_kernel(mats_ref, depth_ref, flow_ref, coords_ref, tdepth_ref,
                      maxd_ref, *, W, TH):
    ht = pl.program_id(1)
    m = lambda i: mats_ref[0, i]                        # scalar reads from SMEM
    xf = lax.broadcasted_iota(jnp.int32, (TH, W), 1).astype(jnp.float32)
    yf = (lax.broadcasted_iota(jnp.int32, (TH, W), 0) + ht * TH).astype(jnp.float32)
    d = depth_ref[0, 0]                                 # (TH, W)
    # K1^{-1} @ [x, y, 1]
    ux = m(0) * xf + m(1) * yf + m(2)
    uy = m(3) * xf + m(4) * yf + m(5)
    uz = m(6) * xf + m(7) * yf + m(8)
    wx = d * ux
    wy = d * uy
    wz = d * uz
    # T = inv(C2W2) @ C2W1 (rows 0..2, homogeneous w = 1)
    tx = m(18) * wx + m(19) * wy + m(20) * wz + m(21)
    ty = m(22) * wx + m(23) * wy + m(24) * wz + m(25)
    tz = m(26) * wx + m(27) * wy + m(28) * wz + m(29)
    # K2 @ [tx, ty, tz]
    px = m(9) * tx + m(10) * ty + m(11) * tz
    py = m(12) * tx + m(13) * ty + m(14) * tz
    pz = m(15) * tx + m(16) * ty + m(17) * tz
    pz_safe = jnp.where(jnp.abs(pz) < 1e-6,
                        jnp.where(pz < 0.0, -1e-6, 1e-6), pz)
    ox = px / pz_safe
    oy = py / pz_safe
    flow_ref[0, 0] = ox - xf                            # dense (TH, W) slab stores
    flow_ref[0, 1] = oy - yf
    coords_ref[0, 0] = ox + 1.0                         # abs x in +1-padded frame
    coords_ref[0, 1] = oy + 1.0
    tdepth_ref[0, 0] = pz
    tile_max = jnp.max(jnp.max(pz, axis=1, keepdims=True), axis=0, keepdims=True)

    @pl.when(ht == 0)
    def _():
        maxd_ref[...] = jnp.full_like(maxd_ref, -jnp.inf)

    maxd_ref[0] = jnp.maximum(maxd_ref[0], tile_max)


# ----------------------------------------------------------------------------
# Kernel 3: depth-weighted bilinear forward splat, tiled over (batch, out-pixel
# tile, src-pixel tile).  The four bilinear-corner scatters are folded into a
# single (TO, TS) weight matrix -> one MXU matmul per *active* grid step.
# A scalar-prefetched per-src-tile destination bounds table skips steps whose
# src tile cannot reach the current out tile.
# ----------------------------------------------------------------------------
def _splat_kernel(bounds_ref, frame_ref, coords_ref, tdepth_ref, scale_ref,
                  frame_out_ref, depth_out_ref, mask_out_ref, acc_ref,
                  *, H, W, C, TO, TS, resident, n_src_tiles):
    b = pl.program_id(0)
    o_idx = pl.program_id(1)
    s_idx = pl.program_id(2)

    @pl.when(s_idx == 0)
    def _():
        acc_ref[...] = jnp.zeros_like(acc_ref)

    o_start = o_idx * TO
    lo = bounds_ref[b, 0, s_idx]
    hi = bounds_ref[b, 1, s_idx]

    # Skip (out-tile, src-tile) pairs whose destination range cannot overlap:
    # the w_mat build (dominant VALU work) + matmul run only when needed.
    @pl.when(jnp.logical_and(lo < o_start + TO, hi >= o_start))
    def _():
        if resident and n_src_tiles > 1:
            s_off = pl.multiple_of(s_idx * TS, 128)
            frame = frame_ref[0, :, pl.ds(s_off, TS)]   # (C, TS)
            coords = coords_ref[0, :, pl.ds(s_off, TS)]  # (2, TS)
            td = tdepth_ref[0, :, pl.ds(s_off, TS)]      # (1, TS)
        else:
            frame = frame_ref[0]
            coords = coords_ref[0]
            td = tdepth_ref[0]

        ox = coords[0:1]                                # padded absolute coords
        oy = coords[1:2]
        fx = jnp.floor(ox)
        fy = jnp.floor(oy)
        cx = jnp.ceil(ox)
        cy = jnp.ceil(oy)
        ox = jnp.clip(ox, 0.0, W + 1.0)
        oy = jnp.clip(oy, 0.0, H + 1.0)
        fx = jnp.clip(fx, 0.0, W + 1.0)
        fy = jnp.clip(fy, 0.0, H + 1.0)
        cx = jnp.clip(cx, 0.0, W + 1.0)
        cy = jnp.clip(cy, 0.0, H + 1.0)
        dx = ox - fx
        dy = oy - fy
        p_nw = (1.0 - dy) * (1.0 - dx)
        p_sw = dy * (1.0 - dx)
        p_ne = (1.0 - dy) * dx
        p_se = dy * dx

        logd = jnp.log(1.0 + jnp.clip(td, 0.0, 1000.0))
        inv_dw = jnp.exp(logd * scale_ref[0, 0])        # = 1 / depth_weights

        base = jnp.concatenate([frame, td, jnp.ones_like(td)], axis=0)   # (C+2, TS)

        fxi = fx.astype(jnp.int32)
        fyi = fy.astype(jnp.int32)
        cxi = cx.astype(jnp.int32)
        cyi = cy.astype(jnp.int32)

        # fold the 4 corner scatters into ONE (TO, TS) weight matrix
        o_iota = lax.broadcasted_iota(jnp.int32, (TO, TS), 0)

        def corner_q(yi, xi):
            inside = (yi >= 1) & (yi <= H) & (xi >= 1) & (xi <= W)
            q = (yi - 1) * W + (xi - 1) - o_start       # cropped idx, tile-relative
            return jnp.where(inside, q, -1)             # -1 never matches iota >= 0

        w_mat = jnp.zeros((TO, TS), jnp.float32)
        for yi, xi, p in ((fyi, fxi, p_nw), (cyi, fxi, p_sw),
                          (fyi, cxi, p_ne), (cyi, cxi, p_se)):
            w_mat = w_mat + jnp.where(o_iota == corner_q(yi, xi), p * inv_dw, 0.0)

        # single MXU matmul per active block: (C+2, TS) x (TO, TS)^T -> (C+2, TO)
        acc_ref[...] += lax.dot_general(base, w_mat, (((1,), (1,)), ((), ())),
                                        preferred_element_type=jnp.float32)

    # finalize: normalize by the splatted weight sum (last src tile)
    @pl.when(s_idx == pl.num_programs(2) - 1)
    def _():
        acc = acc_ref[...]
        wsum = acc[C + 1:C + 2, :]
        valid = wsum > 0.0
        inv = pl.reciprocal(jnp.where(valid, wsum, 1.0), approx=True)
        frame_out_ref[0] = jnp.clip(jnp.where(valid, acc[0:C] * inv, -1.0),
                                    -1.0, 1.0)
        depth_out_ref[0] = jnp.where(valid, acc[C:C + 1] * inv, 0.0)
        mask_out_ref[0] = valid.astype(jnp.float32)


def _bilinear_splat(frame, coords, tdepth, scale, view_repeat):
    Bp, _, H, W = coords.shape
    C = frame.shape[1]
    N = H * W
    r = view_repeat
    budget = _vmem_budget_bytes()

    TO = _pick_tile(N, 1024)
    TS = _pick_tile(N, 1024)
    O = N // TO
    S = N // TS

    frame_f = frame.reshape(frame.shape[0], C, N).astype(jnp.float32)
    coords_f = coords.reshape(Bp, 2, N)
    td_f = tdepth.reshape(Bp, 1, N)

    # Conservative per-src-tile destination-index bounds (scalar prefetch) used
    # to skip empty (out-tile, src-tile) grid steps.
    ox = coords_f[:, 0]
    oy = coords_f[:, 1]
    fxi = jnp.clip(jnp.floor(ox), 1.0, float(W)).astype(jnp.int32)
    fyi = jnp.clip(jnp.floor(oy), 1.0, float(H)).astype(jnp.int32)
    cxi = jnp.clip(jnp.ceil(ox), 1.0, float(W)).astype(jnp.int32)
    cyi = jnp.clip(jnp.ceil(oy), 1.0, float(H)).astype(jnp.int32)
    lo = (fyi - 1) * W + (fxi - 1)
    hi = (cyi - 1) * W + (cxi - 1)
    bounds = jnp.stack([jnp.min(lo.reshape(Bp, S, TS), axis=-1),
                        jnp.max(hi.reshape(Bp, S, TS), axis=-1)],
                       axis=1).astype(jnp.int32)                    # (Bp, 2, S)

    # Keep per-view source slabs VMEM-resident (fetched once per view) when they
    # fit the per-generation budget; otherwise stream per src tile.
    resident_in_bytes = 2 * (C + 3) * N * 4            # double-buffered inputs
    temps_bytes = 3 * TO * TS * 4 + 4 * _MIB           # w_mat/iota temporaries + slack
    resident = resident_in_bytes + temps_bytes <= budget

    if resident:
        frame_spec = pl.BlockSpec((1, C, N), lambda b, o, s, *_: (b // r, 0, 0))
        coords_spec = pl.BlockSpec((1, 2, N), lambda b, o, s, *_: (b, 0, 0))
        td_spec = pl.BlockSpec((1, 1, N), lambda b, o, s, *_: (b, 0, 0))
    else:
        frame_spec = pl.BlockSpec((1, C, TS), lambda b, o, s, *_: (b // r, 0, s))
        coords_spec = pl.BlockSpec((1, 2, TS), lambda b, o, s, *_: (b, 0, s))
        td_spec = pl.BlockSpec((1, 1, TS), lambda b, o, s, *_: (b, 0, s))
    scale_spec = pl.BlockSpec((1, 1), lambda b, o, s, *_: (0, 0),
                              memory_space=pltpu.MemorySpace.SMEM)

    cost = pl.CostEstimate(
        flops=int(Bp * O * S * (2 * (C + 2) + 14) * TO * TS),
        transcendentals=int(Bp * O * S * 2 * TS),
        bytes_accessed=int(Bp * (C + 3) * N * 4 * (1 if resident else O)
                           + Bp * (C + 4) * N * 4))

    frame_out, depth_out, mask_out = pl.pallas_call(
        functools.partial(_splat_kernel, H=H, W=W, C=C, TO=TO, TS=TS,
                          resident=resident, n_src_tiles=S),
        out_shape=(jax.ShapeDtypeStruct((Bp, C, N), jnp.float32),
                   jax.ShapeDtypeStruct((Bp, 1, N), jnp.float32),
                   jax.ShapeDtypeStruct((Bp, 1, N), jnp.float32)),
        grid_spec=pltpu.PrefetchScalarGridSpec(
            num_scalar_prefetch=1,
            grid=(Bp, O, S),
            in_specs=[frame_spec, coords_spec, td_spec, scale_spec],
            out_specs=(pl.BlockSpec((1, C, TO), lambda b, o, s, *_: (b, 0, o)),
                       pl.BlockSpec((1, 1, TO), lambda b, o, s, *_: (b, 0, o)),
                       pl.BlockSpec((1, 1, TO), lambda b, o, s, *_: (b, 0, o))),
            scratch_shapes=[pltpu.VMEM((C + 2, TO), jnp.float32)]),
        compiler_params=pltpu.CompilerParams(
            dimension_semantics=("parallel", "parallel", "arbitrary"),
            vmem_limit_bytes=budget),
        cost_estimate=cost,
    )(bounds, frame_f, coords_f, td_f, scale)

    warped_frame = frame_out.reshape(Bp, C, H, W)
    warped_depth = depth_out.reshape(Bp, 1, H, W)
    mask = mask_out.reshape(Bp, 1, H, W)
    return warped_frame, mask, warped_depth


# ----------------------------------------------------------------------------
# Warper.forward_warp equivalent.
# `frame1` / `depth1` may be un-repeated (batch B'/view_repeat); the view repeat
# is realised via the BlockSpec index_map instead of jnp.repeat.
# ----------------------------------------------------------------------------
def forward_warp(frame1, depth1, transformation1, transformation2,
                 intrinsic1, intrinsic2=None, view_repeat=1):
    Bp = transformation1.shape[0]
    _, C, H, W = frame1.shape
    r = view_repeat
    if intrinsic2 is None:
        intrinsic2 = intrinsic1
    k1_inv = jnp.linalg.inv(intrinsic1.astype(jnp.float32))                   # (B', 3, 3)
    trans = jnp.linalg.inv(transformation2.astype(jnp.float32)) @ \
        transformation1.astype(jnp.float32)                                   # (B', 4, 4)
    mats = jnp.concatenate([k1_inv.reshape(Bp, 9),
                            intrinsic2.astype(jnp.float32).reshape(Bp, 9),
                            trans.reshape(Bp, 16)], axis=1).astype(jnp.float32)

    TH = _pick_row_tile(H)
    flow, coords, tdepth, maxd = pl.pallas_call(
        functools.partial(_transform_kernel, W=W, TH=TH),
        out_shape=(jax.ShapeDtypeStruct((Bp, 2, H, W), jnp.float32),
                   jax.ShapeDtypeStruct((Bp, 2, H, W), jnp.float32),
                   jax.ShapeDtypeStruct((Bp, 1, H, W), jnp.float32),
                   jax.ShapeDtypeStruct((Bp, 1, 1), jnp.float32)),
        grid=(Bp, H // TH),
        in_specs=[pl.BlockSpec((1, 34), lambda b, t: (b, 0),
                               memory_space=pltpu.MemorySpace.SMEM),
                  pl.BlockSpec((1, 1, TH, W), lambda b, t: (b // r, 0, t, 0))],
        out_specs=(pl.BlockSpec((1, 2, TH, W), lambda b, t: (b, 0, t, 0)),
                   pl.BlockSpec((1, 2, TH, W), lambda b, t: (b, 0, t, 0)),
                   pl.BlockSpec((1, 1, TH, W), lambda b, t: (b, 0, t, 0)),
                   pl.BlockSpec((1, 1, 1), lambda b, t: (b, 0, 0))),
        compiler_params=pltpu.CompilerParams(
            dimension_semantics=("parallel", "arbitrary")),
    )(mats, depth1.astype(jnp.float32))

    # Global maximum over the transformed depths (matches torch log_depth1.max():
    # log(1+clip(.)) is monotone, so max of per-view maxima is exact).
    max_td = jnp.max(maxd)
    maxlog = jnp.log(1.0 + jnp.clip(max_td, 0.0, 1000.0))
    scale = jnp.where(maxlog > 0.0, -50.0 / maxlog, 0.0).reshape(1, 1).astype(jnp.float32)

    warped_frame, mask, warped_depth = _bilinear_splat(
        frame1.astype(jnp.float32), coords, tdepth, scale, view_repeat=r)
    return warped_frame, mask, warped_depth, flow


def unnormalize_intrinsic(k, size):
    h, w = size
    scale = jnp.array([w, h, 1.0], jnp.float32).reshape(1, 3, 1)   # row0 *= w, row1 *= h
    return k.astype(jnp.float32) * scale


# ----------------------------------------------------------------------------
# DepthWarping_wrapper.forward equivalent
# ----------------------------------------------------------------------------
def depth_warping_forward(batch):
    tgt_intr = batch['target']['intrinsics']             # (b, v, 3, 3), normalized
    b, v = tgt_intr.shape[:2]
    ctx_img = batch['context']['image']                  # (b, 3, h, w), values in [0, 1]
    h, w = ctx_img.shape[-2:]

    image = (ctx_img * 2.0 - 1.0).astype(jnp.float32)    # context image, NOT view-repeated

    c2w_ctxt = jnp.repeat(batch['context']['extrinsics'][:, 0], v, axis=0)   # (b v, 4, 4)
    c2w_trgt = jnp.linalg.inv(batch['target']['extrinsics']).reshape(b * v, 4, 4)
    intr_ctxt = unnormalize_intrinsic(
        jnp.repeat(batch['context']['intrinsics'][:, 0], v, axis=0), (h, w))
    intr_trgt = unnormalize_intrinsic(tgt_intr.reshape(b * v, 3, 3), (h, w))

    depth_ctxt = depth_proxy(image)                      # (b, 1, h, w) synthetic depth model

    variable_intrinsic = batch['variable_intrinsic']

    # warp #1: context -> target views (image/depth re-read per view via index_map)
    warped_trgt, mask_trgt, warped_depth_trgt, flow_f = forward_warp(
        image, depth_ctxt, c2w_ctxt, c2w_trgt, intr_ctxt,
        intr_trgt if variable_intrinsic else None, view_repeat=v)
    # warp #2: warped targets -> context view
    warped_src, mask_src, warped_depth_src, flow_b = forward_warp(
        warped_trgt, warped_depth_trgt, c2w_trgt, c2w_ctxt, intr_trgt, None,
        view_repeat=1)

    return flow_f, flow_b, warped_trgt, depth_ctxt, warped_depth_trgt


if __name__ == "__main__":
    key = jax.random.PRNGKey(0)
    b, v, c, h, w = 1, 2, 3, 16, 16

    def rot_y(a):
        ca, sa = jnp.cos(a), jnp.sin(a)
        return jnp.array([[ca, 0.0, sa], [0.0, 1.0, 0.0], [-sa, 0.0, ca]], jnp.float32)

    def pose(r, t):
        m = jnp.eye(4, dtype=jnp.float32)
        m = m.at[:3, :3].set(r)
        m = m.at[:3, 3].set(jnp.array(t, jnp.float32))
        return m

    ctx_image = jax.random.uniform(key, (b, c, h, w), jnp.float32)
    ctx_extrinsics = jnp.eye(4, dtype=jnp.float32)[None, None]          # (b, 1, 4, 4) c2w
    ctx_intrinsics = jnp.array([[[0.90, 0.0, 0.50],
                                 [0.0, 0.90, 0.50],
                                 [0.0, 0.0, 1.0]]], jnp.float32)[:, None]   # (b, 1, 3, 3)

    tgt_c2w = jnp.stack([pose(rot_y(0.10), (0.15, 0.02, 0.10)),
                         pose(rot_y(-0.12), (-0.10, 0.01, 0.05))])[None]    # (b, v, 4, 4)
    tgt_extrinsics = jnp.linalg.inv(tgt_c2w)    # module inverts these back to c2w
    tgt_intrinsics = jnp.array([[[0.85, 0.0, 0.50],
                                 [0.0, 0.85, 0.50],
                                 [0.0, 0.0, 1.0]],
                                [[0.95, 0.0, 0.48],
                                 [0.0, 0.95, 0.52],
                                 [0.0, 0.0, 1.0]]], jnp.float32)[None]      # (b, v, 3, 3)

    batch = {
        'context': {'image': ctx_image,
                    'extrinsics': ctx_extrinsics,
                    'intrinsics': ctx_intrinsics},
        'target': {'extrinsics': tgt_extrinsics,
                   'intrinsics': tgt_intrinsics},
        'variable_intrinsic': True,
    }

    outs = depth_warping_forward(batch)
    outs = jax.block_until_ready(outs)
    flow_f, flow_b, warped_trgt, depth_ctxt, warped_depth_trgt = outs
    assert flow_f.shape == (b * v, 2, h, w)
    assert flow_b.shape == (b * v, 2, h, w)
    assert warped_trgt.shape == (b * v, c, h, w)
    assert depth_ctxt.shape == (b, 1, h, w)
    assert warped_depth_trgt.shape == (b * v, 1, h, w)
    for o in outs:
        assert bool(jnp.all(jnp.isfinite(o)))
    print("KERNEL_OK")
</pallas_src>

<mosaic_0001>
module attributes {stable_mosaic.version = 11 : i64} {
  func.func @_depth_proxy_kernel(%arg0: i32, %arg1: i32, %arg2: memref<1x3x16x16xf32, #tpu.memory_space<vmem>>, %arg3: memref<1x1x16x16xf32, #tpu.memory_space<vmem>>) attributes {dimension_semantics = [#tpu.dimension_semantics<parallel>, #tpu.dimension_semantics<parallel>], iteration_bounds = array<i64: 1, 1>, scalar_prefetch = 0 : i64, scratch_operands = 0 : i64, tpu.core_type = #tpu.core_type<tc>, window_params = [{transform_indices = @transform_0, window_bounds = array<i64: 1, 3, 16, 16>}, {transform_indices = @transform_1, window_bounds = array<i64: 1, 1, 16, 16>}]} {
    %c0 = arith.constant 0 : index
    %c0_0 = arith.constant 0 : index
    %c0_1 = arith.constant 0 : index
    %c0_2 = arith.constant 0 : index
    %0 = vector.load %arg2[%c0, %c0_0, %c0_1, %c0_2] : memref<1x3x16x16xf32, #tpu.memory_space<vmem>>, vector<1x1x16x16xf32>
    %1 = vector.shape_cast %0 : vector<1x1x16x16xf32> to vector<16x16xf32>
    %c0_3 = arith.constant 0 : index
    %c1 = arith.constant 1 : index
    %c0_4 = arith.constant 0 : index
    %c0_5 = arith.constant 0 : index
    %2 = vector.load %arg2[%c0_3, %c1, %c0_4, %c0_5] : memref<1x3x16x16xf32, #tpu.memory_space<vmem>>, vector<1x1x16x16xf32>
    %3 = vector.shape_cast %2 : vector<1x1x16x16xf32> to vector<16x16xf32>
    %c0_6 = arith.constant 0 : index
    %c2 = arith.constant 2 : index
    %c0_7 = arith.constant 0 : index
    %c0_8 = arith.constant 0 : index
    %4 = vector.load %arg2[%c0_6, %c2, %c0_7, %c0_8] : memref<1x3x16x16xf32, #tpu.memory_space<vmem>>, vector<1x1x16x16xf32>
    %5 = vector.shape_cast %4 : vector<1x1x16x16xf32> to vector<16x16xf32>
    %cst = arith.constant 3.000000e-01 : f32
    %6 = vector.broadcast %cst : f32 to vector<16x16xf32>
    %7 = arith.mulf %6, %1 : vector<16x16xf32>
    %cst_9 = arith.constant -2.000000e-01 : f32
    %8 = vector.broadcast %cst_9 : f32 to vector<16x16xf32>
    %9 = arith.mulf %8, %3 : vector<16x16xf32>
    %10 = arith.addf %7, %9 : vector<16x16xf32>
    %cst_10 = arith.constant 5.000000e-01 : f32
    %11 = vector.broadcast %cst_10 : f32 to vector<16x16xf32>
    %12 = arith.mulf %11, %5 : vector<16x16xf32>
    %13 = arith.addf %10, %12 : vector<16x16xf32>
    %cst_11 = arith.constant 1.000000e-01 : f32
    %14 = vector.broadcast %cst_11 : f32 to vector<16x16xf32>
    %15 = arith.addf %13, %14 : vector<16x16xf32>
    %16 = arith.negf %15 : vector<16x16xf32>
    %17 = math.exp %16 : vector<16x16xf32>
    %cst_12 = arith.constant 1.000000e+00 : f32
    %18 = vector.broadcast %cst_12 : f32 to vector<16x16xf32>
    %19 = arith.addf %18, %17 : vector<16x16xf32>
    %20 = arith.divf %18, %19 : vector<16x16xf32>
    %cst_13 = arith.constant 2.000000e+00 : f32
    %21 = vector.broadcast %cst_13 : f32 to vector<16x16xf32>
    %22 = arith.mulf %21, %20 : vector<16x16xf32>
    %cst_14 = arith.constant 1.500000e+00 : f32
    %23 = vector.broadcast %cst_14 : f32 to vector<16x16xf32>
    %24 = arith.addf %23, %22 : vector<16x16xf32>
    %c0_15 = arith.constant 0 : index
    %c0_16 = arith.constant 0 : index
    %c0_17 = arith.constant 0 : index
    %c0_18 = arith.constant 0 : index
    %25 = vector.load %arg3[%c0_15, %c0_16, %c0_17, %c0_18] : memref<1x1x16x16xf32, #tpu.memory_space<vmem>>, vector<1x1x16x16xf32>
    %26 = vector.shape_cast %25 : vector<1x1x16x16xf32> to vector<16x16xf32>
    %27 = vector.shape_cast %24 : vector<16x16xf32> to vector<1x1x16x16xf32>
    tpu.vector_store %arg3[%c0_15, %c0_16, %c0_17, %c0_18], %27 {strides = array<i32>} : memref<1x1x16x16xf32, #tpu.memory_space<vmem>>, vector<1x1x16x16xf32>,
    return
  }
  func.func @transform_0(%arg0: i32, %arg1: i32) -> (i32, i32, i32, i32) {
    %c0_i32 = arith.constant 0 : i32
    %c0_i32_0 = arith.constant 0 : i32
    %c0_i32_1 = arith.constant 0 : i32
    return %arg0, %c0_i32, %arg1, %c0_i32_0 : i32, i32, i32, i32
  }
  func.func @transform_1(%arg0: i32, %arg1: i32) -> (i32, i32, i32, i32) {
    %c0_i32 = arith.constant 0 : i32
    %c0_i32_0 = arith.constant 0 : i32
    %c0_i32_1 = arith.constant 0 : i32
    return %arg0, %c0_i32, %arg1, %c0_i32_0 : i32, i32, i32, i32
  }
}

</mosaic_0001>

<bundles_post_ra>
// kernel: tpu_custom_call.1
= control target key start
LH: loop header
LB: loop body
LE: loop exit
PB: predicated region body
PF: predicated region fallthrough
CT: control target
= control target key end

     0   :  { %6 = vsyncpa [#allocation3], 0  ;;  %s163_s0 = inlined_call_operand.hbm [shape: f32[1,3,16,16], index: 0, kind: input, shape index: {}]   ;;  %s164_s1 = inlined_call_operand.hbm [shape: f32[1,1,16,16], index: 1, kind: output, shape index: {}]  }
   0x1   :  { %7 = vsyncpa [#allocation4], 0  ;;  %s137_s6 = smov [#allocation2]  }
   0x2   :  { %s13_s7 = sshll.u32 %s137_s6, 4  ;;  %s14_s7 = int_to_ptr.vmem [resolvable:$true] %s13_s7 }
   0x3   :  { %s101_s8 = scalar_lea.vmem %s14_s7, 768  ;;  %p106_p1 = scmp.lt.s32.totalorder %s14_s7, %s14_s7 }
   0x4   :  { %p102_p0 = scmp.ne.s32.totalorder %s14_s7, %s101_s8  ;;  %p107_p2 = scmp.lt.s32.totalorder %s101_s8, %s101_s8 }
   0x6   :  { %p108_p3 = por %p107_p2, %p106_p1 }
   0x8   :  { %p109_p4 = pnand %p108_p3, %p102_p0 }
   0xa   :  { %112 = shalt.err (!%p109_p4)
}
   0xb   :  { %s138_s9 = smov 128   ;;  %s139_s10 = smov 8  }
   0xc   :  { %19 = dma.hbm_to_vmem [thread:$0]  %s163_s0, 768, %s14_s7, [#allocation3], %s138_s9, %s138_s9, %s139_s10  }
   0xd   :  { %133 = dma.done.wait [#allocation3], 768  }
   0xe   :  { %134 = vsyncadd [#allocation3], 4294966528  ;;  %v23_v0 = vld [vmem:[#allocation2] sm:$0xff]  ;;  %v26_v1 = vld [vmem:[#allocation2 + $0x10] sm:$0xff]  ;;  %vm59_vm0 = vcmask 130048   ;;  %s140_s0 = smov [#allocation5]  }
   0xf   :  { %v29_v2 = vld [vmem:[#allocation2 + $0x20] sm:$0xff]  ;;  %v31_v3 = vmul.f32 0.3, %v23_v0  ;;  %v33_v4 = vmul.f32 -0.2, %v26_v1  ;;  %v24_v6 = vld [vmem:[#allocation2 + $0x8] sm:$0xff] }
  0x10   :  { %v37_v5 = vmul.f32 0.5, %v29_v2  ;;  %v27_v7 = vld [vmem:[#allocation2 + $0x18] sm:$0xff]  ;;  %v30_v8 = vld [vmem:[#allocation2 + $0x28] sm:$0xff]  ;;  %v32_v9 = vmul.f32 0.3, %v24_v6  ;;  %s67_s13 = sshll.u32 %s140_s0, 4  ;;  %s68_s13 = int_to_ptr.vmem [resolvable:$true] %s67_s13 }
  0x11   :  { %v35_v10 = vadd.f32 %v33_v4, %v31_v3  ;;  %v34_v11 = vmul.f32 -0.2, %v27_v7  ;;  %v38_v12 = vmul.f32 0.5, %v30_v8  ;;  %s113_s14 = scalar_lea.vmem %s68_s13, 256  ;;  %p118_p6 = scmp.lt.s32.totalorder %s68_s13, %s68_s13 }
  0x12   :  { %p114_p5 = scmp.ne.s32.totalorder %s68_s13, %s113_s14  ;;  %p119_p7 = scmp.lt.s32.totalorder %s113_s14, %s113_s14 }
  0x13   :  { %v39_v13 = vadd.f32 %v37_v5, %v35_v10  ;;  %v36_v14 = vadd.f32 %v34_v11, %v32_v9 }
  0x14   :  { %p120_p8 = por %p119_p7, %p118_p6 }
  0x15   :  { %v41_v15 = vadd.f32 0.1, %v39_v13  ;;  %v40_v16 = vadd.f32 %v38_v12, %v36_v14 }
  0x16   :  { %p121_p9 = pnand %p120_p8, %p114_p5 }
  0x17   :  { %v79_v17 = vmul.f32 -1.442695, %v41_v15  ;;  %v42_v18 = vadd.f32 0.1, %v40_v16 }
  0x19   :  { %85 = vpow2.f32 %v79_v17  ;;  %v80_v19 = vmul.f32 -1.442695, %v42_v18 }
  0x1b   :  { %87 = vpow2.f32 %v80_v19 }
  0x26   :  { %v86_v20 = vpop.eup %85 }
  0x27   :  { %v49_v21 = vadd.f32 1.0, %v86_v20 }
  0x28   :  { %v88_v22 = vpop.eup %87 }
  0x29   :  { %89 = vrcp.f32 %v49_v21  ;;  %v50_v23 = vadd.f32 1.0, %v88_v22 }
  0x2b   :  { %91 = vrcp.f32 %v50_v23 }
  0x36   :  { %v90_v24 = vpop.eup %89 }
  0x37   :  { %v55_v25 = vmul.f32 2.0, %v90_v24 }
  0x38   :  { %v92_v26 = vpop.eup %91 }
  0x39   :  { %v57_v27 = vadd.f32 1.5, %v55_v25  ;;  %v56_v28 = vmul.f32 2.0, %v92_v26 }
  0x3b   :  { %60 = vst.msk [vmem:[#allocation5] sm:$0xff] %vm59_vm0, %v57_v27  ;;  %v58_v29 = vadd.f32 1.5, %v56_v28 }
  0x3d   :  { %61 = vst.msk [vmem:[#allocation5 + $0x8] sm:$0xff] %vm59_vm0, %v58_v29 }
  0x3e   :  { %124 = shalt.err (!%p121_p9)
}
  0x3f   :  { %73 = dma.vmem_to_hbm [thread:$0]  %s68_s13, 256, %s164_s1, [#allocation4], %s138_s9, %s138_s9, %s139_s10  }
  0x40   :  { %135 = dma.done.wait [#allocation4], 256  }
  0x41   :  { %136 = vsyncadd [#allocation4], 4294967040 }
  0x42   :  { %77 = vsyncpa [#allocation3], 1 }
  0x43   :  { %78 = vsyncpa [#allocation4], 1 }

</bundles_post_ra>
